<compile_context>
chip_gen: v7x
topology: tpu7x:2x2x1
jax: 0.10.0
libtpu: 0.0.40
codegen_flags: <defaults>
</compile_context>

<pallas_src>
import jax
import jax.numpy as jnp
from jax import lax
from jax.experimental import pallas as pl
from jax.experimental.pallas import tpu as pltpu

EPS = 1e-5


# ----------------------------------------------------------------------------
# Kernel: fat layer only.  x_hat = sigmoid(bn3(relu(a @ fatW^T + fat_bias)))
# ----------------------------------------------------------------------------
def decoder_fat_kernel(a_ref, fatw_ref, bnb_ref, out_ref):
    a = a_ref[...]                                   # (B, H) resident
    # (B, H) x (TN, H)^T contracted on H, f32 accumulate on the MXU.
    xh = lax.dot_general(
        a, fatw_ref[...],
        dimension_numbers=(((1,), (1,)), ((), ())),
        preferred_element_type=jnp.float32,
    )
    bnb = bnb_ref[...]                               # (3, TN): [bias; gamma; beta]
    xh = jnp.maximum(xh + bnb[0:1, :], 0.0)

    # BatchNorm1d, training mode: per-column batch mean / biased variance,
    # folded into a single scale/shift FMA on the big tile.
    mean = jnp.mean(xh, axis=0, keepdims=True)
    c = xh - mean
    var = jnp.mean(c * c, axis=0, keepdims=True)
    scale = bnb[1:2, :] * lax.rsqrt(var + EPS)
    shift = bnb[2:3, :] - scale * mean
    xh = xh * scale + shift

    # sigmoid via tanh -> EUP slot (no VALU divide on the largest tensor).
    out_ref[...] = (0.5 * (1.0 + jnp.tanh(0.5 * xh))).astype(out_ref.dtype)


# ----------------------------------------------------------------------------
# Tile-size / VMEM-budget selection
# ----------------------------------------------------------------------------
def _default_vmem_limit():
    """~48 MiB on v7x (64 MiB VMEM), ~96 MiB on v5e/v6e (128 MiB VMEM)."""
    try:
        cap = pltpu.get_tpu_info().vmem_capacity_bytes
    except Exception:
        cap = 64 << 20
    return min(100 << 20, int(cap * 0.75))


def _choose_tn(num_inputs, H, B, w_itemsize, out_itemsize, vmem_budget, tn):
    h_pad = max(128, -(-H // 128) * 128)       # lane padding of the weight tile
    b_pad = max(8, -(-B // 8) * 8)             # sublane padding of the out tile

    def tile_bytes(t):
        return (2 * t * h_pad * w_itemsize     # fat-weight tile, double-buffered
                + 2 * b_pad * t * out_itemsize  # output tile, double-buffered
                + 2 * 8 * t * 4)               # packed (3,tn) bias/bn3 (8 sublanes)

    if tn is None:
        tn = 32768                             # primary knob: big tiles amortize
    tn = min(tn, num_inputs)                   # the ~0.35us per-step overhead
    if tn < num_inputs:
        tn = max(128, (tn // 128) * 128)

    # Shrink until the double-buffered working set fits the VMEM budget.
    while tn > 128 and tile_bytes(tn) > vmem_budget:
        tn = max(128, ((tn // 2) // 128) * 128)

    # Prefer an even tile count (>=2) so v7x's two TensorCores stay balanced.
    n_tiles = -(-num_inputs // tn)
    if n_tiles > 1 and n_tiles % 2 == 1:
        cand = max(128, ((-(-num_inputs // (n_tiles + 1)) + 127) // 128) * 128)
        if (-(-num_inputs // cand)) % 2 == 0 and tile_bytes(cand) <= vmem_budget:
            tn = cand
    return tn


# ----------------------------------------------------------------------------
# Wrapper
# ----------------------------------------------------------------------------
def decoder_forward(x, params, fat_layer_weights, *, tn=None,
                    vmem_limit_bytes=None, out_dtype=jnp.float32):
    """x: (B, latent_dim) f32, fat_layer_weights: (num_inputs, n_hidden1_u)."""
    B, _ = x.shape
    num_inputs, H = fat_layer_weights.shape

    if vmem_limit_bytes is None:
        vmem_limit_bytes = _default_vmem_limit()

    # ---- layers 1-2 hoisted out of the kernel (tiny tensors, one pass) ----
    def bn_train(a, g, b):
        m = jnp.mean(a, axis=0, keepdims=True)
        v = jnp.mean((a - m) ** 2, axis=0, keepdims=True)
        scale = g * lax.rsqrt(v + EPS)
        return a * scale + (b - scale * m)

    a = jax.nn.relu(x @ params["fc_w"].T + params["fc_b"])
    a = bn_train(a, params["bn_g"], params["bn_b"])
    a = jax.nn.relu(a @ params["fc2_w"].T + params["fc2_b"])
    a = bn_train(a, params["bn2_g"], params["bn2_b"])
    # Match the fat weight's dtype (bf16 producers get the bf16 MXU path;
    # f32 producers keep exact PyTorch semantics). Casting (B,H) is free.
    a = a.astype(fat_layer_weights.dtype)

    # Pack fat_bias / bn3 gamma / bn3 beta into one (3, num_inputs) array so
    # the kernel issues a single small DMA per grid step instead of three.
    bnb = jnp.stack(
        [params["fat_bias"], params["bn3_g"], params["bn3_b"]], axis=0
    ).astype(jnp.float32)

    tn = _choose_tn(
        num_inputs, H, B,
        w_itemsize=fat_layer_weights.dtype.itemsize,
        out_itemsize=jnp.dtype(out_dtype).itemsize,
        vmem_budget=int(0.75 * vmem_limit_bytes),
        tn=tn,
    )
    grid = (pl.cdiv(num_inputs, tn),)

    in_specs = [
        pl.BlockSpec((B, H), lambda j: (0, 0)),      # a: resident
        pl.BlockSpec((tn, H), lambda j: (j, 0)),     # fat weight tile (streamed)
        pl.BlockSpec((3, tn), lambda j: (0, j)),     # packed bias/gamma/beta tile
    ]
    out_spec = pl.BlockSpec((B, tn), lambda j: (0, j))

    return pl.pallas_call(
        decoder_fat_kernel,
        out_shape=jax.ShapeDtypeStruct((B, num_inputs), out_dtype),
        grid=grid,
        in_specs=in_specs,
        out_specs=out_spec,
        compiler_params=pltpu.CompilerParams(
            dimension_semantics=("parallel",),       # shard fat tiles on v7x 2 TCs
            vmem_limit_bytes=vmem_limit_bytes,
        ),
    )(a, fat_layer_weights, bnb)


# ----------------------------------------------------------------------------
# Synthetic params + pure-JAX reference (PyTorch training-mode forward, f32)
# ----------------------------------------------------------------------------
def init_params(key, num_inputs, n_hidden1_u, latent_dim):
    h2 = n_hidden1_u // 2
    ks = jax.random.split(key, 4)

    def lin_w(k, out_f, in_f):
        bound = 1.0 / jnp.sqrt(in_f)
        return jax.random.uniform(k, (out_f, in_f), jnp.float32, -bound, bound)

    def lin_b(k, out_f, in_f):
        bound = 1.0 / jnp.sqrt(in_f)
        return jax.random.uniform(k, (out_f,), jnp.float32, -bound, bound)

    return {
        "fc_w": lin_w(ks[0], h2, latent_dim),
        "fc_b": lin_b(ks[1], h2, latent_dim),
        "bn_g": jnp.ones((h2,), jnp.float32),
        "bn_b": jnp.zeros((h2,), jnp.float32),
        "fc2_w": lin_w(ks[2], n_hidden1_u, h2),
        "fc2_b": lin_b(ks[3], n_hidden1_u, h2),
        "bn2_g": jnp.ones((n_hidden1_u,), jnp.float32),
        "bn2_b": jnp.zeros((n_hidden1_u,), jnp.float32),
        "fat_bias": jnp.zeros((num_inputs,), jnp.float32),   # nn.init.zeros_
        "bn3_g": jnp.ones((num_inputs,), jnp.float32),
        "bn3_b": jnp.zeros((num_inputs,), jnp.float32),
    }


def decoder_reference(x, params, fat_layer_weights):
    def bn(a, g, b):
        m = jnp.mean(a, axis=0, keepdims=True)
        v = jnp.mean((a - m) ** 2, axis=0, keepdims=True)
        return g * (a - m) / jnp.sqrt(v + EPS) + b

    a = jax.nn.relu(x @ params["fc_w"].T + params["fc_b"])
    a = bn(a, params["bn_g"], params["bn_b"])
    a = jax.nn.relu(a @ params["fc2_w"].T + params["fc2_b"])
    a = bn(a, params["bn2_g"], params["bn2_b"])
    xh = a @ fat_layer_weights.T + params["fat_bias"]
    xh = jax.nn.relu(xh)
    xh = bn(xh, params["bn3_g"], params["bn3_b"])
    return jax.nn.sigmoid(xh)


if __name__ == "__main__":
    # Small shapes consistent with the module's forward; tn=256 is passed
    # explicitly so the 1-D grid over the fat axis has several tiles (4) and
    # the pipelining path is exercised even at this toy size.
    B, latent_dim, n_hidden1_u, num_inputs = 8, 16, 64, 1024

    key = jax.random.PRNGKey(0)
    k_x, k_fat, k_p = jax.random.split(key, 3)

    x = jax.random.normal(k_x, (B, latent_dim), jnp.float32)
    fat_layer_weights = (
        jax.random.normal(k_fat, (num_inputs, n_hidden1_u), jnp.float32) * 0.1
    )
    params = init_params(k_p, num_inputs, n_hidden1_u, latent_dim)

    out = decoder_forward(x, params, fat_layer_weights, tn=256)
    out = jax.block_until_ready(out)

    ref = decoder_reference(x, params, fat_layer_weights)
    assert out.shape == (B, num_inputs)
    assert bool(jnp.all(jnp.isfinite(out)))
    assert jnp.allclose(out, ref, atol=2e-3, rtol=2e-3)

    print("KERNEL_OK")
</pallas_src>

<mosaic_0001>
module attributes {stable_mosaic.version = 11 : i64} {
  func.func @decoder_fat_kernel(%arg0: i32, %arg1: memref<8x64xf32, #tpu.memory_space<vmem>>, %arg2: memref<256x64xf32, #tpu.memory_space<vmem>>, %arg3: memref<3x256xf32, #tpu.memory_space<vmem>>, %arg4: memref<8x256xf32, #tpu.memory_space<vmem>>) attributes {dimension_semantics = [#tpu.dimension_semantics<parallel>], iteration_bounds = array<i64: 4>, scalar_prefetch = 0 : i64, scratch_operands = 0 : i64, tpu.core_type = #tpu.core_type<tc>, window_params = [{pipeline_mode = #tpu.pipeline_mode<synchronous>, transform_indices = @transform_0, window_bounds = array<i64: 8, 64>}, {transform_indices = @transform_1, window_bounds = array<i64: 256, 64>}, {transform_indices = @transform_2, window_bounds = array<i64: 3, 256>}, {transform_indices = @transform_3, window_bounds = array<i64: 8, 256>}]} {
    %c0 = arith.constant 0 : index
    %c0_0 = arith.constant 0 : index
    %0 = vector.load %arg1[%c0, %c0_0] : memref<8x64xf32, #tpu.memory_space<vmem>>, vector<8x64xf32>
    %c0_1 = arith.constant 0 : index
    %c0_2 = arith.constant 0 : index
    %1 = vector.load %arg2[%c0_1, %c0_2] : memref<256x64xf32, #tpu.memory_space<vmem>>, vector<256x64xf32>
    %cst = arith.constant dense<0.000000e+00> : vector<8x256xf32>
    %2 = tpu.matmul %0, %1, %cst {dimension_numbers = #tpu.dot_dimension_numbers<[1], [1], [0], [0], [0, 0, 1, 0], [], []>} : vector<8x64xf32>, vector<256x64xf32>, vector<8x256xf32> -> vector<8x256xf32>
    %c0_3 = arith.constant 0 : index
    %c0_4 = arith.constant 0 : index
    %3 = vector.load %arg3[%c0_3, %c0_4] : memref<3x256xf32, #tpu.memory_space<vmem>>, vector<3x256xf32>
    %4 = vector.extract_strided_slice %3 {offsets = [0, 0], sizes = [1, 256], strides = [1, 1]} : vector<3x256xf32> to vector<1x256xf32>
    %5 = vector.broadcast %4 : vector<1x256xf32> to vector<8x256xf32>
    %6 = arith.addf %2, %5 : vector<8x256xf32>
    %cst_5 = arith.constant 0.000000e+00 : f32
    %7 = vector.broadcast %cst_5 : f32 to vector<8x256xf32>
    %8 = arith.maximumf %6, %7 : vector<8x256xf32>
    %cst_6 = arith.constant dense<0.000000e+00> : vector<256xf32>
    %9 = vector.multi_reduction <add>, %8, %cst_6 [0] : vector<8x256xf32> to vector<256xf32>
    %10 = vector.shape_cast %9 : vector<256xf32> to vector<1x256xf32>
    %cst_7 = arith.constant 8.000000e+00 : f32
    %11 = vector.broadcast %cst_7 : f32 to vector<1x256xf32>
    %12 = arith.divf %10, %11 : vector<1x256xf32>
    %13 = vector.broadcast %12 : vector<1x256xf32> to vector<8x256xf32>
    %14 = arith.subf %8, %13 : vector<8x256xf32>
    %15 = arith.mulf %14, %14 : vector<8x256xf32>
    %cst_8 = arith.constant dense<0.000000e+00> : vector<256xf32>
    %16 = vector.multi_reduction <add>, %15, %cst_8 [0] : vector<8x256xf32> to vector<256xf32>
    %17 = vector.shape_cast %16 : vector<256xf32> to vector<1x256xf32>
    %cst_9 = arith.constant 8.000000e+00 : f32
    %18 = vector.broadcast %cst_9 : f32 to vector<1x256xf32>
    %19 = arith.divf %17, %18 : vector<1x256xf32>
    %20 = vector.extract_strided_slice %3 {offsets = [1, 0], sizes = [1, 256], strides = [1, 1]} : vector<3x256xf32> to vector<1x256xf32>
    %cst_10 = arith.constant 9.99999974E-6 : f32
    %21 = vector.broadcast %cst_10 : f32 to vector<1x256xf32>
    %22 = arith.addf %19, %21 : vector<1x256xf32>
    %23 = math.rsqrt %22 : vector<1x256xf32>
    %24 = arith.mulf %20, %23 : vector<1x256xf32>
    %25 = vector.extract_strided_slice %3 {offsets = [2, 0], sizes = [1, 256], strides = [1, 1]} : vector<3x256xf32> to vector<1x256xf32>
    %26 = arith.mulf %24, %12 : vector<1x256xf32>
    %27 = arith.subf %25, %26 : vector<1x256xf32>
    %28 = vector.broadcast %24 : vector<1x256xf32> to vector<8x256xf32>
    %29 = arith.mulf %8, %28 : vector<8x256xf32>
    %30 = vector.broadcast %27 : vector<1x256xf32> to vector<8x256xf32>
    %31 = arith.addf %29, %30 : vector<8x256xf32>
    %cst_11 = arith.constant 5.000000e-01 : f32
    %32 = vector.broadcast %cst_11 : f32 to vector<8x256xf32>
    %33 = arith.mulf %32, %31 : vector<8x256xf32>
    %34 = math.tanh %33 : vector<8x256xf32>
    %cst_12 = arith.constant 1.000000e+00 : f32
    %35 = vector.broadcast %cst_12 : f32 to vector<8x256xf32>
    %36 = arith.addf %35, %34 : vector<8x256xf32>
    %cst_13 = arith.constant 5.000000e-01 : f32
    %37 = vector.broadcast %cst_13 : f32 to vector<8x256xf32>
    %38 = arith.mulf %37, %36 : vector<8x256xf32>
    %c0_14 = arith.constant 0 : index
    %c0_15 = arith.constant 0 : index
    %39 = vector.load %arg4[%c0_14, %c0_15] : memref<8x256xf32, #tpu.memory_space<vmem>>, vector<8x256xf32>
    tpu.vector_store %arg4[%c0_14, %c0_15], %38 {strides = array<i32>} : memref<8x256xf32, #tpu.memory_space<vmem>>, vector<8x256xf32>,
    return
  }
  func.func @transform_0(%arg0: i32) -> (i32, i32) {
    %c0_i32 = arith.constant 0 : i32
    %c0_i32_0 = arith.constant 0 : i32
    %c0_i32_1 = arith.constant 0 : i32
    return %c0_i32, %c0_i32_0 : i32, i32
  }
  func.func @transform_1(%arg0: i32) -> (i32, i32) {
    %c0_i32 = arith.constant 0 : i32
    %c0_i32_0 = arith.constant 0 : i32
    return %arg0, %c0_i32 : i32, i32
  }
  func.func @transform_2(%arg0: i32) -> (i32, i32) {
    %c0_i32 = arith.constant 0 : i32
    %c0_i32_0 = arith.constant 0 : i32
    return %c0_i32, %arg0 : i32, i32
  }
  func.func @transform_3(%arg0: i32) -> (i32, i32) {
    %c0_i32 = arith.constant 0 : i32
    %c0_i32_0 = arith.constant 0 : i32
    return %c0_i32, %arg0 : i32, i32
  }
}

</mosaic_0001>

<bundles_post_ra>
// kernel: tpu_custom_call.1
= control target key start
LH: loop header
LB: loop body
LE: loop exit
PB: predicated region body
PF: predicated region fallthrough
CT: control target
= control target key end

     0   :  { %8 = vsyncpa [#allocation3], 0  ;;  %s1071_s0 = inlined_call_operand.vmem [shape: f32[8,64], index: 0, kind: input, shape index: {}]   ;;  %s1072_s1 = inlined_call_operand.vmem [shape: f32[1024,64], index: 1, kind: input, shape index: {}]   ;;  %s1073_s2 = inlined_call_operand.vmem [shape: f32[3,1024], index: 2, kind: input, shape index: {}]   ;;  %s1074_s3 = inlined_call_operand.hbm [shape: f32[8,1024], index: 3, kind: output, shape index: {}]  }
   0x1   :  { %10 = vsyncpa [#allocation3 + $0x1], 0  ;;  %s873_s12 = smov 0   ;;  %s875_s13 = smov 0  }
   0x2   :  { %s877_s14 = smov 0   ;;  %s879_s15 = smov 0  }
   0x3 LB: > { %s894_s16 = sadd.s32 4294967295, %s850_s15   ;;  %s611_s17 = sadd.s32 4294967294, %s850_s15   ;;  %s850_s15 = sphi %s879_s15, %s1082_s15   ;;  %s846_s14 = sphi %s877_s14, %s1081_s14   ;;  %s842_s13 = sphi %s875_s13, %s1080_s13   ;;  %s838_s12 = sphi %s873_s12, %s1079_s12  }
   0x4   : > { %s898_s18 = sadd.s32 1, %s850_s15   ;;  %s96_s19 = sadd.s32 1, %s846_s14 }
   0x5   : > { %s93_s20 = ssub.s32 %s850_s15, %s898_s18  ;;  %p106_p0 = scmp.ne.s32.totalorder %s846_s14, %s842_s13 }
   0x6   : > { %p94_p1 = scmp.eq.s32.totalorder %s93_s20, 0  ;;  %p107_p2 = scmp.eq.s32.totalorder %s894_s16, 3 }
   0x7   : > { %p112_p3 = scmp.ne.s32.totalorder %s842_s13, %s838_s12  ;;  %p113_p4 = scmp.eq.s32.totalorder %s611_s17, 3 }
   0x8   : > { %s909_s21 = scalar_select %p94_p1, %s846_s14, %s96_s19  }
   0x9   : > { %p911_p5 = por %p107_p2, %p106_p0  ;;  %p915_p6 = por %p113_p4, %p112_p3 }
   0xa   : > { %p614_p7 = scmp.ge.s32.totalorder %s850_s15, 1  ;;  %p152_p8 = scmp.lt.s32.totalorder %s850_s15, 5 }
   0xc   : > { %p153_p9 = pnand %p614_p7, %p152_p8 }
   0xd   : > { %s616_s24 = sshll.u32 (!%p153_p9), %s894_s16, 5  ;;  %vm247_vm0 = vcmask (!%p153_p9), 523264   ;;  %v925_v0 = vld [vmem:[%s1071_s0] sm:$0xff] (!%p153_p9)  ;;  %s618_s4 = sshll.u32 (!%p153_p9), %s894_s16, 1  ;;  %v229_v50 = vlaneseq (!%p153_p9) }
   0xe   : > { %156 = sbr.rel (%p153_p9) target bundleno = 403 (0x193), region = 32  ;;  %p182_p10 = scmp.lt.s32.totalorder (!%p153_p9), %s616_s24, 127  ;;  %691 = vmatprep.mubr.msk.f32.mxu0 (!%p153_p9), %vm247_vm0, %v925_v0  ;;  %vm936_vm1 = vmpackc.low (!%p153_p9), %vm247_vm0, %vm247_vm0 }
   0xf   : > { %p188_p11 = scmp.lt.s32.totalorder (!%p153_p9), %s618_s4, 7  ;;  %v1007_v51 = vshrl.u32 (!%p153_p9), %v229_v50, 7  ;;  %s178_s9 = sand.u32 (!%p153_p9), 1, %s842_s13  }
  0x10   : > { %s615_s10 = sshll.u32 (!%p153_p9), %s178_s9, 4  ;;  %s658_s11 = sshll.u32 (!%p153_p9), %s894_s16, 8 }
  0x11   : > { %v231_v52 = vsub.s32 (!%p153_p9), 0, %v1007_v51  ;;  %v235_v54 = vsub.s32 (!%p153_p9), 4, %v1007_v51  ;;  %v501_v50 = vsub.s32 (!%p153_p9), 6, %v1007_v51  ;;  %s180_s17 = scalar_lea.vmem (!%p153_p9), [#allocation2], %s615_s10  ;;  %s1029_s25 = scalar_lea.hbm (!%p153_p9), %s1074_s3, %s658_s11 }
  0x12   : > { %s540_s19 = sshll.u32 (!%p153_p9), %s180_s17, 4  ;;  %s526_s26 = scalar_lea.sflag (!%p153_p9), [#allocation3], %s178_s9  ;;  %s1031_s19 = int_to_ptr.vmem [resolvable:$true] %s540_s19 }
  0x13   : > { %s852_s16 = smov (!%p153_p9), [#allocation2]  }
  0x14   : > { %s792_s28 = sshll.u32 (!%p153_p9), %s852_s16, 4  ;;  %s793_s28 = int_to_ptr.vmem [resolvable:$false] %s792_s28 }
  0x15   : > { %s1084_s24 = smov (!%p182_p10, %s616_s24), 127  ;;  %s1086_s4 = smov (!%p188_p11, %s618_s4), 7 }
  0x16   : > { %s617_s27 = sshll.u32 %s1084_s24, 3  ;;  %s619_s5 = sshll.u32 %s1086_s4, 2 }
  0x17   : > { %s932_s30 = scalar_lea.vmem %s1072_s1, %s617_s27  ;;  %s191_s8 = scalar_lea.vmem %s1073_s2, %s619_s5 }
  0x18   : > { %v211_v2 = vld [vmem:[%s932_s30 + $0x80] sm:$0xff]  ;;  %v212_v3 = vld [vmem:[%s932_s30 + $0x88] sm:$0xff]  ;;  %v213_v7 = vld [vmem:[%s932_s30 + $0x90] sm:$0xff]  ;;  %s788_s27 = scalar_lea.vmem %s1031_s19, 256  ;;  %s794_s29 = scalar_lea.vmem %s793_s28, 512 }
  0x19   : > { %v195_v4 = vld [vmem:[%s932_s30] sm:$0xff]  ;;  %v693_v5 = vpack.c.bf16 %v212_v3, %v211_v2  ;;  %v196_v6 = vld [vmem:[%s932_s30 + $0x8] sm:$0xff]  ;;  %v214_v8 = vld [vmem:[%s932_s30 + $0x98] sm:$0xff]  ;;  %p789_p12 = scmp.ne.s32.totalorder %s1031_s19, %s788_s27  ;;  %p795_p1 = scmp.lt.s32.totalorder %s1031_s19, %s793_s28 }
  0x1a   : > { %v696_v9 = vpack.c.bf16 %v196_v6, %v195_v4  ;;  %v699_v10 = vpack.c.bf16 %v214_v8, %v213_v7  ;;  %v197_v11 = vld [vmem:[%s932_s30 + $0x10] sm:$0xff]  ;;  %v198_v12 = vld [vmem:[%s932_s30 + $0x18] sm:$0xff]  ;;  %v215_v13 = vld [vmem:[%s932_s30 + $0xa0] sm:$0xff]  ;;  %p796_p2 = scmp.lt.s32.totalorder %s794_s29, %s788_s27 }
  0x1b   : > { %695 = vmatprep.subr.msk.bf16.mxu0 %vm936_vm1, %v693_v5  ;;  %v216_v14 = vld [vmem:[%s932_s30 + $0xa8] sm:$0xff]  ;;  %v702_v15 = vpack.c.bf16 %v198_v12, %v197_v11  ;;  %v199_v17 = vld [vmem:[%s932_s30 + $0x20] sm:$0xff]  ;;  %v217_v19 = vld [vmem:[%s932_s30 + $0xb0] sm:$0xff]  ;;  %p790_p13 = pnand %p789_p12, %p911_p5 }
  0x1c   : > { %698 = vmatpush3.bf16.xpose.msk.msra.mxu0 %vm936_vm1, %v696_v9  ;;  %v705_v16 = vpack.c.bf16 %v216_v14, %v215_v13  ;;  %v200_v18 = vld [vmem:[%s932_s30 + $0x28] sm:$0xff]  ;;  %v218_v20 = vld [vmem:[%s932_s30 + $0xb8] sm:$0xff]  ;;  %v201_v23 = vld [vmem:[%s932_s30 + $0x30] sm:$0xff]  ;;  %p797_p3 = por %p796_p2, %p795_p1 }
  0x1d   : > { %701 = vmatprep.subr.msk.bf16.mxu0 %vm936_vm1, %v699_v10  ;;  %v708_v21 = vpack.c.bf16 %v200_v18, %v199_v17  ;;  %v711_v22 = vpack.c.bf16 %v218_v20, %v217_v19  ;;  %v202_v24 = vld [vmem:[%s932_s30 + $0x38] sm:$0xff]  ;;  %v219_v25 = vld [vmem:[%s932_s30 + $0xc0] sm:$0xff]  ;;  %v220_v26 = vld [vmem:[%s932_s30 + $0xc8] sm:$0xff]  ;;  %p791_p0 = pneg %p790_p13 }
  0x1e   : > { %v714_v27 = vpack.c.bf16 %v202_v24, %v201_v23  ;;  %v717_v28 = vpack.c.bf16 %v220_v26, %v219_v25  ;;  %v203_v29 = vld [vmem:[%s932_s30 + $0x40] sm:$0xff]  ;;  %v204_v30 = vld [vmem:[%s932_s30 + $0x48] sm:$0xff]  ;;  %v221_v31 = vld [vmem:[%s932_s30 + $0xd0] sm:$0xff] }
  0x1f   : > { %v222_v32 = vld [vmem:[%s932_s30 + $0xd8] sm:$0xff]  ;;  %v720_v33 = vpack.c.bf16 %v204_v30, %v203_v29  ;;  %v205_v35 = vld [vmem:[%s932_s30 + $0x50] sm:$0xff]  ;;  %v223_v37 = vld [vmem:[%s932_s30 + $0xe0] sm:$0xff]  ;;  %p798_p4 = pnand %p797_p3, %p791_p0 }
  0x20   : > { %v723_v34 = vpack.c.bf16 %v222_v32, %v221_v31  ;;  %v206_v36 = vld [vmem:[%s932_s30 + $0x58] sm:$0xff]  ;;  %v224_v38 = vld [vmem:[%s932_s30 + $0xe8] sm:$0xff]  ;;  %v207_v41 = vld [vmem:[%s932_s30 + $0x60] sm:$0xff] }
  0x21   : > { %v726_v39 = vpack.c.bf16 %v206_v36, %v205_v35  ;;  %v729_v40 = vpack.c.bf16 %v224_v38, %v223_v37  ;;  %v208_v42 = vld [vmem:[%s932_s30 + $0x68] sm:$0xff]  ;;  %v225_v43 = vld [vmem:[%s932_s30 + $0xf0] sm:$0xff]  ;;  %v226_v44 = vld [vmem:[%s932_s30 + $0xf8] sm:$0xff] }
  0x22   : > { %v732_v45 = vpack.c.bf16 %v208_v42, %v207_v41  ;;  %v735_v46 = vpack.c.bf16 %v226_v44, %v225_v43  ;;  %v209_v47 = vld [vmem:[%s932_s30 + $0x70] sm:$0xff]  ;;  %v210_v48 = vld [vmem:[%s932_s30 + $0x78] sm:$0xff]  ;;  %v1013_v53 = vld [vmem:[%s191_s8] sm:$0x77]  ;;  %v480_v41 = vsub.s32 5, %v1007_v51 }
  0x23   : > { %v738_v49 = vpack.c.bf16 %v210_v48, %v209_v47  ;;  %v232_v55 = vrot.slane %v1013_v53, %v231_v52  ;;  %v236_v56 = vrot.slane %v1013_v53, %v235_v54  ;;  %v497_v47 = vsub.s32 2, %v1007_v51 }
  0x24   : > { %704 = vmatpush3.bf16.xpose.msk.msra.mxu0 %vm936_vm1, %v702_v15 }
  0x25   : > { %707 = vmatprep.subr.msk.bf16.mxu0 %vm936_vm1, %v705_v16  ;;  %v242_v57 = vrot.slane %v232_v55, %v231_v52  ;;  %v246_v58 = vrot.slane %v236_v56, %v231_v52 }
  0x2c   : > { %710 = vmatpush3.bf16.xpose.msk.msra.mxu0 %vm936_vm1, %v708_v21 }
  0x2d   : > { %713 = vmatprep.subr.msk.bf16.mxu0 %vm936_vm1, %v711_v22 }
  0x34   : > { %716 = vmatpush3.bf16.xpose.msk.msra.mxu0 %vm936_vm1, %v714_v27 }
  0x35   : > { %719 = vmatprep.subr.msk.bf16.mxu0 %vm936_vm1, %v717_v28 }
  0x3c   : > { %722 = vmatpush3.bf16.xpose.msk.msra.mxu0 %vm936_vm1, %v720_v33 }
  0x3d   : > { %725 = vmatprep.subr.msk.bf16.mxu0 %vm936_vm1, %v723_v34 }
  0x44   : > { %728 = vmatpush3.bf16.xpose.msk.msra.mxu0 %vm936_vm1, %v726_v39 }
  0x45   : > { %731 = vmatprep.subr.msk.bf16.mxu0 %vm936_vm1, %v729_v40  ;;  %v476_v40 = vsub.s32 1, %v1007_v51 }
  0x4c   : > { %734 = vmatpush3.bf16.xpose.msk.msra.mxu0 %vm936_vm1, %v732_v45 }
  0x4d   : > { %737 = vmatprep.subr.msk.bf16.mxu0 %vm936_vm1, %v735_v46 }
  0x54   : > { %740 = vmatpush3.bf16.xpose.msk.msra.mxu0 %vm936_vm1, %v738_v49 }
  0x5b   : > { %692 = vmatmul.mubr.msk.f32.vlgmr.msra.gmra.mrb[0].mxu0 %vm247_vm0, %v925_v0 }
 0x12e   : > { %v413_v59 = vpop.f32.mrb[0].mxu0 }
 0x12f   : > { %v414_v60 = vadd.f32 %v413_v59, %v242_v57  ;;  %v415_v61 = vpop.f32.mrb[1].mxu0 }
 0x130   : > { %v416_v62 = vadd.f32 %v415_v61, %v246_v58 }
 0x131   : > { %v418_v63 = vmax.f32 %v414_v60, 0.0 }
 0x132   : > { %v419_v0 = vmax.f32 %v416_v62, 0.0 }
 0x133   : > { %v420_v1 = vrot.slane %v418_v63, 4 }
 0x134   : > { %v426_v2 = vrot.slane %v419_v0, 4 }
 0x135   : > { %v421_v3 = vadd.f32 %v420_v1, %v418_v63 }
 0x136   : > { %v427_v4 = vadd.f32 %v426_v2, %v419_v0 }
 0x137   : > { %v422_v5 = vrot.slane %v421_v3, 2 }
 0x138   : > { %v428_v6 = vrot.slane %v427_v4, 2 }
 0x139   : > { %v423_v7 = vadd.f32 %v422_v5, %v421_v3 }
 0x13a   : > { %v429_v8 = vadd.f32 %v428_v6, %v427_v4 }
 0x13b   : > { %v424_v9 = vrot.slane %v423_v7, 1 }
 0x13c   : > { %v430_v10 = vrot.slane %v429_v8, 1 }
 0x13d   : > { %v425_v11 = vadd.f32 %v424_v9, %v423_v7 }
 0x13e   : > { %v431_v12 = vadd.f32 %v430_v10, %v429_v8 }
 0x13f   : > { %v433_v13 = vmul.f32 0.125, %v425_v11 }
 0x140   : > { %v434_v14 = vmul.f32 0.125, %v431_v12 }
 0x141   : > { %v435_v15 = vsub.f32 %v418_v63, %v433_v13 }
 0x142   : > { %v436_v16 = vsub.f32 %v419_v0, %v434_v14  ;;  %v465_v17 = vcombine.low %v433_v13, %v434_v14 }
 0x143   : > { %v437_v18 = vmul.f32 %v435_v15, %v435_v15 }
 0x144   : > { %v438_v19 = vmul.f32 %v436_v16, %v436_v16  ;;  %v466_v43 = vrot.slane %v465_v17, 7 }
 0x145   : > { %v439_v20 = vrot.slane %v437_v18, 4 }
 0x146   : > { %v445_v21 = vrot.slane %v438_v19, 4 }
 0x147   : > { %v440_v22 = vadd.f32 %v439_v20, %v437_v18 }
 0x148   : > { %v446_v23 = vadd.f32 %v445_v21, %v438_v19 }
 0x149   : > { %v441_v24 = vrot.slane %v440_v22, 2 }
 0x14a   : > { %v447_v25 = vrot.slane %v446_v23, 2 }
 0x14b   : > { %v442_v26 = vadd.f32 %v441_v24, %v440_v22 }
 0x14c   : > { %v448_v27 = vadd.f32 %v447_v25, %v446_v23 }
 0x14d   : > { %v443_v28 = vrot.slane %v442_v26, 1 }
 0x14e   : > { %v449_v29 = vrot.slane %v448_v27, 1 }
 0x14f   : > { %v444_v30 = vadd.f32 %v443_v28, %v442_v26 }
 0x150   : > { %v450_v31 = vadd.f32 %v449_v29, %v448_v27 }
 0x151   : > { %v451_v32 = vmul.f32 0.125, %v444_v30 }
 0x152   : > { %v452_v33 = vmul.f32 0.125, %v450_v31 }
 0x153   : > { %v453_v34 = vadd.f32 1e-05, %v451_v32 }
 0x154   : > { %v454_v35 = vadd.f32 1e-05, %v452_v33 }
 0x155   : > { %780 = vrsqrt.f32 %v453_v34 }
 0x156   : > { %782 = vrsqrt.f32 %v454_v35 }
 0x15f   : > { %v781_v36 = vpop.eup %780 }
 0x160   : > { %v783_v37 = vpop.eup %782 }
 0x161   : > { %v459_v38 = vcombine.low %v781_v36, %v783_v37 }
 0x163   : > { %v460_v39 = vrot.slane %v459_v38, 7 }
 0x165   : > { %v462_v42 = vmul.f32 %v460_v39, %v1013_v53 }
 0x167   : > { %v468_v44 = vmul.f32 %v466_v43, %v462_v42  ;;  %v481_v45 = vrot.slane %v462_v42, %v480_v41  ;;  %v477_v46 = vrot.slane %v462_v42, %v476_v40 }
 0x169   : > { %v470_v48 = vrot.slane %v468_v44, 7  ;;  %v491_v49 = vrot.slane %v481_v45, %v476_v40  ;;  %v487_v52 = vrot.slane %v477_v46, %v476_v40 }
 0x16b   : > { %v472_v54 = vsub.f32 %v1013_v53, %v470_v48  ;;  %v493_v55 = vmul.f32 %v491_v49, %v419_v0  ;;  %v492_v56 = vmul.f32 %v487_v52, %v418_v63 }
 0x16d   : > { %v502_v57 = vrot.slane %v472_v54, %v501_v50  ;;  %v498_v58 = vrot.slane %v472_v54, %v497_v47 }
 0x16f   : > { %v512_v59 = vrot.slane %v502_v57, %v497_v47  ;;  %v508_v60 = vrot.slane %v498_v58, %v497_v47 }
 0x171   : > { %v514_v61 = vadd.f32 %v512_v59, %v493_v55  ;;  %v513_v62 = vadd.f32 %v508_v60, %v492_v56 }
 0x173   : > { %v515_v1 = vmul.f32 0.5, %v513_v62  ;;  %v516_v2 = vmul.f32 0.5, %v514_v61 }
 0x175   : > { %784 = vtanh.f32 %v515_v1 }
 0x176   : > { %786 = vtanh.f32 %v516_v2 }
 0x17f   : > { %v785_v3 = vpop.eup %784 }
 0x180   : > { %v787_v51 = vpop.eup %786  ;;  %v519_v4 = vadd.f32 1.0, %v785_v3 }
 0x181   : > { %v520_v53 = vadd.f32 1.0, %v787_v51 }
 0x182   : > { %v521_v63 = vmul.f32 0.5, %v519_v4 }
 0x183   : > { %v522_v0 = vmul.f32 0.5, %v520_v53 }
 0x184   : > { %523 = vst [vmem:[%s180_s17] sm:$0xff] %v521_v63 }
 0x185   : > { %524 = vst [vmem:[%s180_s17 + $0x8] sm:$0xff] %v522_v0 }
 0x186   : > { %801 = shalt.err (!%p798_p4)
}
 0x187   : > { %s802_s30 = scalar_lea.hbm %s1029_s25, 256  ;;  %s806_s6 = scalar_lea.hbm %s1074_s3, 1024 }
 0x188   : > { %p803_p7 = scmp.ne.s32.totalorder %s1029_s25, %s802_s30  ;;  %p807_p10 = scmp.lt.u32.totalorder %s1029_s25, %s1074_s3 }
 0x189   : > { %p808_p11 = scmp.lt.u32.totalorder %s806_s6, %s802_s30  ;;  %p810_p13 = scmp.lt.u32.totalorder %s802_s30, %s1029_s25 }
 0x18a   : > { %p804_p8 = pnand %p803_p7, %p911_p5 }
 0x18b   : > { %p809_p12 = por %p808_p11, %p807_p10 }
 0x18c   : > { %p805_p9 = pneg %p804_p8 }
 0x18d   : > { %p811_p0 = por %p810_p13, %p809_p12 }
 0x18f   : > { %p812_p1 = pnand %p811_p0, %p805_p9 }
 0x191   : > { %815 = shalt.err (!%p812_p1)
}
 0x192   : > { %741 = dma.vmem_to_hbm [thread:$0]  (%p911_p5), %s1031_s19, 256, %s1029_s25, %s526_s26  }
 0x193 PF: > { %p747_p2 = scmp.ge.s32.totalorder %s850_s15, 2  ;;  %s552_s9 = sand.u32 1, %s838_s12  }
 0x194   : > { %s553_s10 = scalar_lea.sflag [#allocation3], %s552_s9 }
 0x195   : > { %p744_p3 = pnand %p747_p2, %p915_p6 }
 0x197   : > { %833 = dma.done.wait (!%p744_p3), %s553_s10, 256  }
 0x198   : > { %835 = vsyncadd (!%p744_p3), %s553_s10, 4294967040  ;;  %p13_p4 = scmp.ge.s32.totalorder %s898_s18, 6   ;;  %s1079_s12 = smov %s842_s13 }
 0x199   : > { %s1080_s13 = smov %s846_s14  ;;  %s1081_s14 = smov %s909_s21 }
 0x19a   : > { %s1082_s15 = smov %s898_s18  ;;  %15 = sbr.rel (!%p13_p4) target bundleno = 3 (0x3), region = 70 }
 0x1a1   :  { %558 = vsyncpa [#allocation3], 1 }
 0x1a2   :  { %560 = vsyncpa [#allocation3 + $0x1], 1 }

</bundles_post_ra>
